<compile_context>
chip_gen: v5e
topology: v5e:2x2
jax: 0.10.0
libtpu: 0.0.40
codegen_flags: <defaults>
</compile_context>

<pallas_src>
import jax
import jax.numpy as jnp
from jax.experimental import pallas as pl
from jax.experimental.pallas import tpu as pltpu


def head_kernel(x_ref, w1_ref, b1_ref, w2_ref, b2_ref, o_ref):
    # Hot path: two matmuls + bias + ReLU, fused in VMEM on one batch tile.
    x = x_ref[...]                                              # (TILE_B, in_dim)
    h = jnp.dot(x, w1_ref[...], preferred_element_type=jnp.float32)
    h = h + b1_ref[...]                                         # broadcast (1, 32)
    h = jnp.maximum(h, 0.0)                                     # ReLU
    # Dropout(0.25) in eval mode == identity.
    out = jnp.dot(h, w2_ref[...], preferred_element_type=jnp.float32)
    out = out + b2_ref[...]                                     # broadcast (1, 2)
    o_ref[...] = out.astype(o_ref.dtype)


def _round_up(n, m):
    return ((n + m - 1) // m) * m


def _choose_tile_b(B, in_dim, out_dim, vmem_budget_bytes=32 << 20):
    """Largest multiple-of-8 batch tile whose double-buffered blocks fit budget."""
    # Double-buffered x block + double-buffered out block (last dim lane-pads
    # to >=128 in VMEM); resident weights are tiny for hidden=32/out=2.
    bytes_per_row = 2 * in_dim * 4 + 2 * max(out_dim, 128) * 4
    max_rows = max(8, vmem_budget_bytes // bytes_per_row)
    tile = min(1024, (max_rows // 8) * 8)
    tile = max(8, tile)
    # Don't pick a tile larger than the (8-padded) batch itself.
    tile = min(tile, _round_up(B, 8))
    return tile


def head_module_forward(x, w1, b1, w2, b2, *, tile_b=None):
    """x: (B, in_dim) f32. Returns (B, 2) f32 (eval-mode HeadModule forward)."""
    B, in_dim = x.shape
    hidden = w1.shape[1]
    out_dim = w2.shape[1]

    if tile_b is None:
        tile_b = _choose_tile_b(B, in_dim, out_dim)
    tile_b = max(8, (tile_b // 8) * 8)

    # Pad batch to a multiple of tile_b; padded rows are discarded afterwards.
    B_pad = _round_up(B, tile_b)
    if B_pad != B:
        x = jnp.pad(x, ((0, B_pad - B), (0, 0)))

    grid = (B_pad // tile_b,)

    out = pl.pallas_call(
        head_kernel,
        out_shape=jax.ShapeDtypeStruct((B_pad, out_dim), jnp.float32),
        grid=grid,
        in_specs=[
            # x: tiled along batch -> pipelined HBM->VMEM DMA per grid step.
            pl.BlockSpec((tile_b, in_dim), lambda i: (i, 0)),
            # Weights / biases: constant index_map -> VMEM-resident, no re-DMA.
            pl.BlockSpec((in_dim, hidden), lambda i: (0, 0)),
            pl.BlockSpec((1, hidden), lambda i: (0, 0)),
            pl.BlockSpec((hidden, out_dim), lambda i: (0, 0)),
            pl.BlockSpec((1, out_dim), lambda i: (0, 0)),
        ],
        out_specs=pl.BlockSpec((tile_b, out_dim), lambda i: (i, 0)),
        compiler_params=pltpu.CompilerParams(
            # Batch tiles are independent -> megacore-shardable on v7x.
            dimension_semantics=("parallel",),
            # 48 MiB: below v7x's 64 MiB physical VMEM, above default scoped
            # limits on v5e/v6e so large in_dim tiles still double-buffer.
            vmem_limit_bytes=48 << 20,
        ),
    )(x, w1, b1, w2, b2)

    return out[:B] if B_pad != B else out


def init_params(key, in_dim, hidden=32, out_dim=2):
    """Deterministic init mimicking nn.Linear's U(-1/sqrt(fan_in), 1/sqrt(fan_in))."""
    k1, k2, k3, k4 = jax.random.split(key, 4)
    bound1 = 1.0 / jnp.sqrt(in_dim)
    bound2 = 1.0 / jnp.sqrt(hidden)
    # Stored as (in_features, out_features) = torch weight transposed.
    w1 = jax.random.uniform(k1, (in_dim, hidden), jnp.float32, -bound1, bound1)
    b1 = jax.random.uniform(k2, (1, hidden), jnp.float32, -bound1, bound1)
    w2 = jax.random.uniform(k3, (hidden, out_dim), jnp.float32, -bound2, bound2)
    b2 = jax.random.uniform(k4, (1, out_dim), jnp.float32, -bound2, bound2)
    return w1, b1, w2, b2


def _ref_forward(x, w1, b1, w2, b2):
    # Plain-JAX reference (eval-mode dropout == identity).
    return jnp.maximum(x @ w1 + b1, 0.0) @ w2 + b2


if __name__ == "__main__":
    key = jax.random.PRNGKey(0)
    kx1, kx2, kp1, kp2 = jax.random.split(key, 4)

    # Case 1: small, ragged batch (B not a multiple of 8) -> exercises padding.
    B1, in_dim1 = 10, 32
    x1 = jax.random.normal(kx1, (B1, in_dim1), jnp.float32)
    p1 = init_params(kp1, in_dim1)
    out1 = jax.block_until_ready(head_module_forward(x1, *p1))
    ref1 = _ref_forward(x1, *p1)
    assert out1.shape == (B1, 2)
    assert jnp.allclose(out1, ref1, atol=1e-5, rtol=1e-5)

    # Case 2: forced small tile -> exercises a multi-step pipelined batch grid.
    B2, in_dim2 = 40, 64
    x2 = jax.random.normal(kx2, (B2, in_dim2), jnp.float32)
    p2 = init_params(kp2, in_dim2)
    out2 = jax.block_until_ready(head_module_forward(x2, *p2, tile_b=16))
    ref2 = _ref_forward(x2, *p2)
    assert out2.shape == (B2, 2)
    assert jnp.allclose(out2, ref2, atol=1e-5, rtol=1e-5)

    print("KERNEL_OK")
</pallas_src>

<mosaic_0001>
module attributes {stable_mosaic.version = 11 : i64} {
  func.func @head_kernel(%arg0: i32, %arg1: memref<16x32xf32, #tpu.memory_space<vmem>>, %arg2: memref<32x32xf32, #tpu.memory_space<vmem>>, %arg3: memref<1x32xf32, #tpu.memory_space<vmem>>, %arg4: memref<32x2xf32, #tpu.memory_space<vmem>>, %arg5: memref<1x2xf32, #tpu.memory_space<vmem>>, %arg6: memref<16x2xf32, #tpu.memory_space<vmem>>) attributes {dimension_semantics = [#tpu.dimension_semantics<parallel>], iteration_bounds = array<i64: 1>, scalar_prefetch = 0 : i64, scratch_operands = 0 : i64, tpu.core_type = #tpu.core_type<tc>, window_params = [{transform_indices = @transform_0, window_bounds = array<i64: 16, 32>}, {pipeline_mode = #tpu.pipeline_mode<synchronous>, transform_indices = @transform_1, window_bounds = array<i64: 32, 32>}, {pipeline_mode = #tpu.pipeline_mode<synchronous>, transform_indices = @transform_2, window_bounds = array<i64: 1, 32>}, {pipeline_mode = #tpu.pipeline_mode<synchronous>, transform_indices = @transform_3, window_bounds = array<i64: 32, 2>}, {pipeline_mode = #tpu.pipeline_mode<synchronous>, transform_indices = @transform_4, window_bounds = array<i64: 1, 2>}, {transform_indices = @transform_5, window_bounds = array<i64: 16, 2>}]} {
    %c0 = arith.constant 0 : index
    %c0_0 = arith.constant 0 : index
    %0 = vector.load %arg1[%c0, %c0_0] : memref<16x32xf32, #tpu.memory_space<vmem>>, vector<16x32xf32>
    %c0_1 = arith.constant 0 : index
    %c0_2 = arith.constant 0 : index
    %1 = vector.load %arg2[%c0_1, %c0_2] : memref<32x32xf32, #tpu.memory_space<vmem>>, vector<32x32xf32>
    %cst = arith.constant dense<0.000000e+00> : vector<16x32xf32>
    %2 = tpu.matmul %0, %1, %cst {dimension_numbers = #tpu.dot_dimension_numbers<[1], [0], [0], [1], [0, 0, 1, 1], [], []>} : vector<16x32xf32>, vector<32x32xf32>, vector<16x32xf32> -> vector<16x32xf32>
    %c0_3 = arith.constant 0 : index
    %c0_4 = arith.constant 0 : index
    %3 = vector.load %arg3[%c0_3, %c0_4] : memref<1x32xf32, #tpu.memory_space<vmem>>, vector<1x32xf32>
    %4 = vector.broadcast %3 : vector<1x32xf32> to vector<16x32xf32>
    %5 = arith.addf %2, %4 : vector<16x32xf32>
    %cst_5 = arith.constant 0.000000e+00 : f32
    %6 = vector.broadcast %cst_5 : f32 to vector<16x32xf32>
    %7 = arith.maximumf %5, %6 : vector<16x32xf32>
    %c0_6 = arith.constant 0 : index
    %c0_7 = arith.constant 0 : index
    %8 = vector.load %arg4[%c0_6, %c0_7] : memref<32x2xf32, #tpu.memory_space<vmem>>, vector<32x2xf32>
    %cst_8 = arith.constant dense<0.000000e+00> : vector<16x2xf32>
    %9 = tpu.matmul %7, %8, %cst_8 {dimension_numbers = #tpu.dot_dimension_numbers<[1], [0], [0], [1], [0, 0, 1, 1], [], []>} : vector<16x32xf32>, vector<32x2xf32>, vector<16x2xf32> -> vector<16x2xf32>
    %c0_9 = arith.constant 0 : index
    %c0_10 = arith.constant 0 : index
    %10 = vector.load %arg5[%c0_9, %c0_10] : memref<1x2xf32, #tpu.memory_space<vmem>>, vector<1x2xf32>
    %11 = vector.broadcast %10 : vector<1x2xf32> to vector<16x2xf32>
    %12 = arith.addf %9, %11 : vector<16x2xf32>
    %c0_11 = arith.constant 0 : index
    %c0_12 = arith.constant 0 : index
    %13 = vector.load %arg6[%c0_11, %c0_12] : memref<16x2xf32, #tpu.memory_space<vmem>>, vector<16x2xf32>
    tpu.vector_store %arg6[%c0_11, %c0_12], %12 {strides = array<i32>} : memref<16x2xf32, #tpu.memory_space<vmem>>, vector<16x2xf32>,
    return
  }
  func.func @transform_0(%arg0: i32) -> (i32, i32) {
    %c0_i32 = arith.constant 0 : i32
    %c0_i32_0 = arith.constant 0 : i32
    return %arg0, %c0_i32 : i32, i32
  }
  func.func @transform_1(%arg0: i32) -> (i32, i32) {
    %c0_i32 = arith.constant 0 : i32
    %c0_i32_0 = arith.constant 0 : i32
    %c0_i32_1 = arith.constant 0 : i32
    return %c0_i32, %c0_i32_0 : i32, i32
  }
  func.func @transform_2(%arg0: i32) -> (i32, i32) {
    %c0_i32 = arith.constant 0 : i32
    %c0_i32_0 = arith.constant 0 : i32
    %c0_i32_1 = arith.constant 0 : i32
    return %c0_i32, %c0_i32_0 : i32, i32
  }
  func.func @transform_3(%arg0: i32) -> (i32, i32) {
    %c0_i32 = arith.constant 0 : i32
    %c0_i32_0 = arith.constant 0 : i32
    %c0_i32_1 = arith.constant 0 : i32
    return %c0_i32, %c0_i32_0 : i32, i32
  }
  func.func @transform_4(%arg0: i32) -> (i32, i32) {
    %c0_i32 = arith.constant 0 : i32
    %c0_i32_0 = arith.constant 0 : i32
    %c0_i32_1 = arith.constant 0 : i32
    return %c0_i32, %c0_i32_0 : i32, i32
  }
  func.func @transform_5(%arg0: i32) -> (i32, i32) {
    %c0_i32 = arith.constant 0 : i32
    %c0_i32_0 = arith.constant 0 : i32
    return %arg0, %c0_i32 : i32, i32
  }
}

</mosaic_0001>

<bundles_post_ra>
// kernel: tpu_custom_call.1
= control target key start
LH: loop header
LB: loop body
LE: loop exit
PB: predicated region body
PF: predicated region fallthrough
CT: control target
= control target key end

     0   :  { %10 = vsyncpa [#allocation3], 0  ;;  %s166_s21 = smov [#allocation2]   ;;  %s167_s23 = smov 128   ;;  %s242_s0 = inlined_call_operand.hbm [shape: f32[16,32], index: 0, kind: input, shape index: {}]   ;;  %s243_s1 = inlined_call_operand.vmem [shape: f32[32,32], index: 1, kind: input, shape index: {}]   ;;  %s244_s2 = inlined_call_operand.vmem [shape: f32[1,32], index: 2, kind: input, shape index: {}]   ;;  %s245_s3 = inlined_call_operand.vmem [shape: f32[32,2], index: 3, kind: input, shape index: {}]   ;;  %s246_s4 = inlined_call_operand.vmem [shape: f32[1,2], index: 4, kind: input, shape index: {}]   ;;  %s247_s5 = inlined_call_operand.vmem [shape: f32[16,2], index: 5, kind: output, shape index: {}]  }
   0x1   :  { %s15_s20 = sshll.u32 %s242_s0, 4  ;;  %s17_s22 = sshll.u32 %s166_s21, 4  ;;  %s16_s20 = int_to_ptr.hbm [resolvable:$true] %s15_s20  ;;  %s18_s22 = int_to_ptr.vmem [resolvable:$true] %s17_s22 }
   0x2   :  { %s168_s24 = smov 8  }
   0x3   :  { %23 = dma.hbm_to_vmem [thread:$0]  %s16_s20, 256, %s18_s22, [#allocation3], %s167_s23, %s167_s23, %s168_s24  }
   0x4   :  { %164 = dma.done.wait [#allocation3], 256  }
   0x5   :  { %165 = vsyncadd [#allocation3], 4294967040  ;;  %v41_v0 = vld [vmem:[%s243_s1 + $0x18] sm:$0xff]  ;;  %v40_v1 = vld [vmem:[%s243_s1 + $0x10] sm:$0xff]  ;;  %vm46_vm0 = vcmask 261120   ;;  %vm115_vm1 = vcmask 15360  }
   0x6   :  { %127 = vmatpush.msra.mxu2 %v41_v0  ;;  %65 = vmatpush.msra.mxu0 %v41_v0  ;;  %v39_v2 = vld [vmem:[%s243_s1 + $0x8] sm:$0xff]  ;;  %v81_v3 = vld [vmem:[%s245_s3 + $0x18] sm:$0xff]  ;;  %v38_v4 = vld [vmem:[%s243_s1] sm:$0xff] }
   0x7   :  { %131 = vmatpush.msra.mxu3 %v81_v3  ;;  %104 = vmatpush.msra.mxu1 %v81_v3  ;;  %v37_v5 = vld [vmem:[#allocation2 + $0x8] sm:$0xff]  ;;  %v36_v6 = vld [vmem:[#allocation2] sm:$0xff]  ;;  %v80_v7 = vld [vmem:[%s245_s3 + $0x10] sm:$0xff] }
   0x8   :  { %128 = vmatpush.msra.mxu2 %v40_v1  ;;  %66 = vmatpush.msra.mxu0 %v40_v1  ;;  %v79_v8 = vld [vmem:[%s245_s3 + $0x8] sm:$0xff]  ;;  %v78_v9 = vld [vmem:[%s245_s3] sm:$0xff] }
   0x9   :  { %132 = vmatpush.msra.mxu3 %v80_v7  ;;  %105 = vmatpush.msra.mxu1 %v80_v7  ;;  %v138_v10 = vld [vmem:[%s244_s2] ss:$0 sm:$0xff] }
   0xa   :  { %129 = vmatpush.msra.mxu2 %v39_v2  ;;  %67 = vmatpush.msra.mxu0 %v39_v2  ;;  %v139_v17 = vld [vmem:[%s246_s4] ss:$0 sm:$0xff] }
   0xb   :  { %133 = vmatpush.msra.mxu3 %v79_v8  ;;  %106 = vmatpush.msra.mxu1 %v79_v8 }
   0xc   :  { %130 = vmatpush.msra.mxu2 %v38_v4  ;;  %68 = vmatpush.msra.mxu0 %v38_v4 }
   0xd   :  { %124 = vmatmul.msk.f32.vlgmr.msra.gmra.mxu2 %vm46_vm0, %v37_v5  ;;  %123 = vmatmul.msk.f32.vlgmr.msra.gmra.mxu0 %vm46_vm0, %v36_v6 }
   0xe   :  { %134 = vmatpush.msra.mxu3 %v78_v9  ;;  %107 = vmatpush.msra.mxu1 %v78_v9 }
  0x8a   :  { %v70_v11 = vpop.f32.mrf.mxu0 }
  0x8b   :  { %v71_v12 = vadd.f32 %v138_v10, %v70_v11 }
  0x8d   :  { %v76_v13 = vmax.f32 %v71_v12, 0.0 }
  0x8f   :  { %125 = vmatmul.msk.f32.vlgmr.msra.gmra.mxu1 %vm46_vm0, %v76_v13 }
  0x90   :  { %v73_v14 = vpop.f32.mrf.mxu2 }
  0x91   :  { %v74_v15 = vadd.f32 %v138_v10, %v73_v14 }
  0x93   :  { %v77_v16 = vmax.f32 %v74_v15, 0.0 }
  0x95   :  { %126 = vmatmul.msk.f32.vlgmr.msra.gmra.mxu3 %vm46_vm0, %v77_v16 }
 0x10c   :  { %v109_v18 = vpop.f32.mrf.mxu1 }
 0x10d   :  { %v110_v19 = vadd.f32 %v139_v17, %v109_v18 }
 0x10f   :  { %116 = vst.msk [vmem:[%s247_s5] sm:$0xff] %vm115_vm1, %v110_v19 }
 0x118   :  { %v112_v20 = vpop.f32.mrf.mxu3 }
 0x119   :  { %v113_v21 = vadd.f32 %v139_v17, %v112_v20 }
 0x11b   :  { %117 = vst.msk [vmem:[%s247_s5 + $0x8] sm:$0xff] %vm115_vm1, %v113_v21 }
 0x11c   :  { %122 = vsyncpa [#allocation3], 1 }

</bundles_post_ra>
